<compile_context>
chip_gen: v7x
topology: tpu7x:2x2x1
jax: 0.10.0
libtpu: 0.0.40
codegen_flags: <defaults>
</compile_context>

<pallas_src>
import jax
import jax.numpy as jnp
from jax.experimental import pallas as pl
from jax.experimental.pallas import tpu as pltpu

IMAGENET_MEAN = (0.485, 0.456, 0.406)
IMAGENET_STD = (0.229, 0.224, 0.225)

LATENT = 512
M_PAD_MIN = 8                       # one sublane group
VMEM_LIMIT = 32 * 1024 * 1024       # safe on v5e/v6e (128 MiB) and v7x (64 MiB)


def _round_up(x, m):
    return ((x + m - 1) // m) * m


# ----------------------------------------------------------------------------
# Kernel 1: surrogate encoder  feat = relu(x @ W + b), K-tiled, f32 accumulator.
# (ImageNet normalization is pre-folded into W and b, so x is the raw image.)
# ----------------------------------------------------------------------------
def _encoder_kernel(x_ref, w_ref, b_ref, o_ref, acc_ref):
    k = pl.program_id(0)

    @pl.when(k == 0)
    def _():
        acc_ref[...] = jnp.zeros_like(acc_ref)

    acc_ref[...] += jnp.dot(
        x_ref[...].astype(jnp.bfloat16), w_ref[...],
        preferred_element_type=jnp.float32)

    @pl.when(k == pl.num_programs(0) - 1)
    def _():
        o_ref[...] = jnp.maximum(acc_ref[...] + b_ref[...], 0.0)


def encoder_forward(x, w, b, *, tk):
    """x: (Mp, Kp) f32, w: (Kp, LATENT) bf16, b: (1, LATENT) f32 -> (Mp, LATENT)."""
    mp, kp = x.shape
    assert kp % tk == 0
    n = LATENT
    return pl.pallas_call(
        _encoder_kernel,
        out_shape=jax.ShapeDtypeStruct((mp, n), jnp.float32),
        grid_spec=pltpu.PrefetchScalarGridSpec(
            num_scalar_prefetch=0,
            grid=(kp // tk,),
            in_specs=[
                pl.BlockSpec((mp, tk), lambda k: (0, k)),   # x: K tile
                pl.BlockSpec((tk, n), lambda k: (k, 0)),    # W: K tile (bf16)
                pl.BlockSpec((1, n), lambda k: (0, 0)),     # b: resident
            ],
            out_specs=pl.BlockSpec((mp, n), lambda k: (0, 0)),
            scratch_shapes=[pltpu.VMEM((mp, n), jnp.float32)],
        ),
        compiler_params=pltpu.CompilerParams(
            dimension_semantics=("arbitrary",),
            vmem_limit_bytes=VMEM_LIMIT),
    )(x, w, b)


# ----------------------------------------------------------------------------
# Kernel 2: fused PointDecoder (fc0..fc4).  Trunk weights resident in VMEM,
# fc4 weight streamed in lane-dense N tiles; ReLU x4 + Tanh applied in-kernel;
# intermediate activations never leave VMEM.
# ----------------------------------------------------------------------------
def _decoder_kernel(feat_ref, w0, b0, w1, b1, w2, b2, w3, b3, w4t, b4t, o_ref):
    # Trunk recomputed per fc4 N-tile (activations are tiny) so the grid axis
    # can stay "parallel" -> v7x megacore splits the fc4 weight stream.
    h = feat_ref[...]
    for w_ref, b_ref in ((w0, b0), (w1, b1), (w2, b2), (w3, b3)):
        h = jnp.dot(h.astype(jnp.bfloat16), w_ref[...],
                    preferred_element_type=jnp.float32) + b_ref[...]
        h = jnp.maximum(h, 0.0)
    y = jnp.dot(h.astype(jnp.bfloat16), w4t[...],
                preferred_element_type=jnp.float32) + b4t[...]
    o_ref[...] = jnp.tanh(y)


def decoder_forward(feat, p, *, tn):
    mp = feat.shape[0]
    np_out = p["w4"].shape[1]
    assert np_out % tn == 0

    def resident(shape):
        return pl.BlockSpec(shape, lambda j: (0, 0))

    return pl.pallas_call(
        _decoder_kernel,
        out_shape=jax.ShapeDtypeStruct((mp, np_out), jnp.float32),
        grid_spec=pltpu.PrefetchScalarGridSpec(
            num_scalar_prefetch=0,
            grid=(np_out // tn,),
            in_specs=[
                resident((mp, LATENT)),                              # feat
                resident(p["w0"].shape), resident(p["b0"].shape),
                resident(p["w1"].shape), resident(p["b1"].shape),
                resident(p["w2"].shape), resident(p["b2"].shape),
                resident(p["w3"].shape), resident(p["b3"].shape),
                pl.BlockSpec((p["w4"].shape[0], tn), lambda j: (0, j)),  # fc4 W tile
                pl.BlockSpec((1, tn), lambda j: (0, j)),                 # fc4 b tile
            ],
            out_specs=pl.BlockSpec((mp, tn), lambda j: (0, j)),
        ),
        compiler_params=pltpu.CompilerParams(
            dimension_semantics=("parallel",),
            vmem_limit_bytes=VMEM_LIMIT),
    )(feat, p["w0"], p["b0"], p["w1"], p["b1"], p["w2"], p["b2"],
      p["w3"], p["b3"], p["w4"], p["b4"])


# ----------------------------------------------------------------------------
# Parameter construction (deterministic, PyTorch nn.Linear-style init).
# ----------------------------------------------------------------------------
def _init_linear(key, fan_in, fan_out):
    kw, kb = jax.random.split(key)
    bound = 1.0 / jnp.sqrt(float(fan_in))
    w = jax.random.uniform(kw, (fan_in, fan_out), jnp.float32, -bound, bound)
    b = jax.random.uniform(kb, (fan_out,), jnp.float32, -bound, bound)
    return w, b


def make_params(key, img_h, img_w, n_points, *, tk_enc=2048, tn_out=512):
    keys = jax.random.split(key, 6)
    k_in = img_h * img_w * 3
    tk = min(_round_up(tk_enc, 128), _round_up(k_in, 128))
    k_pad = _round_up(k_in, tk)
    n_out = n_points * 3
    tn = min(_round_up(tn_out, 128), _round_up(n_out, 128))
    n_pad = _round_up(n_out, tn)

    # Surrogate encoder (H*W*3 -> 512) with ImageNet normalization folded in:
    #   y = ((x - mean)/std) @ W + b  ==  x @ (W * 1/std) + (b - (mean/std)@W)
    # Flatten order of NHWC images is channel-fastest, i.e. channel = idx % 3.
    w_enc, b_enc = _init_linear(keys[0], k_in, LATENT)
    mean = jnp.asarray(IMAGENET_MEAN, jnp.float32)
    inv_std = 1.0 / jnp.asarray(IMAGENET_STD, jnp.float32)
    w3d = w_enc.reshape(img_h * img_w, 3, LATENT)
    w_fold = (w3d * inv_std[None, :, None]).reshape(k_in, LATENT)
    b_fold = b_enc - jnp.einsum("c,pcn->n", mean * inv_std, w3d)
    w_fold = jnp.pad(w_fold, ((0, k_pad - k_in), (0, 0)))

    params = {
        "enc_w": w_fold.astype(jnp.bfloat16),
        "enc_b": b_fold.reshape(1, LATENT),
    }

    # PointDecoder: exact torch layer sizes; bf16 weights, f32 biases.
    trunk_dims = [(LATENT, 512), (512, 1024), (1024, 1024), (1024, 1024)]
    for i, (fi, fo) in enumerate(trunk_dims):
        w, b = _init_linear(keys[i + 1], fi, fo)
        params[f"w{i}"] = w.astype(jnp.bfloat16)
        params[f"b{i}"] = b.reshape(1, fo)
    w4, b4 = _init_linear(keys[5], 1024, n_out)
    params["w4"] = jnp.pad(w4, ((0, 0), (0, n_pad - n_out))).astype(jnp.bfloat16)
    params["b4"] = jnp.pad(b4, (0, n_pad - n_out)).reshape(1, n_pad)

    params["meta"] = dict(k=k_in, k_pad=k_pad, tk=tk,
                          n_out=n_out, n_pad=n_pad, tn=tn)
    return params


# ----------------------------------------------------------------------------
# Forward pass (SingleViewto3D, cfg['dtype'] == 'point').
# ----------------------------------------------------------------------------
def single_view_to_3d_point(images, params, n_points):
    meta = params["meta"]
    b = images.shape[0]
    m_pad = max(M_PAD_MIN, _round_up(b, 8))
    # permute(0,3,1,2) + Normalize are folded into the encoder weights: the
    # flattened NHWC image (channel-fastest) matches the folded weight layout.
    x = images.reshape(b, -1).astype(jnp.float32)
    x = jnp.pad(x, ((0, m_pad - b), (0, meta["k_pad"] - meta["k"])))
    feat = encoder_forward(x, params["enc_w"], params["enc_b"], tk=meta["tk"])
    out = decoder_forward(feat, params, tn=meta["tn"])
    out = out[:b, : meta["n_out"]]
    return out.reshape(b, n_points, 3)


if __name__ == "__main__":
    B, H, W, C = 2, 16, 16, 3
    N_POINTS = 128   # small, but gives 3 fc4 N-tiles so the streamed path runs

    key = jax.random.PRNGKey(0)
    k_img, k_par = jax.random.split(key)
    images = jax.random.uniform(k_img, (B, H, W, C), jnp.float32)
    # tk_enc=256 -> 3 K-tiles in the encoder; tn_out=128 -> 3 fc4 N-tiles.
    params = make_params(k_par, H, W, N_POINTS, tk_enc=256, tn_out=128)

    out = single_view_to_3d_point(images, params, N_POINTS)
    out = jax.block_until_ready(out)

    assert out.shape == (B, N_POINTS, 3), out.shape
    assert out.dtype == jnp.float32
    assert bool(jnp.all(jnp.isfinite(out)))
    assert bool(jnp.all(jnp.abs(out) <= 1.0))  # tanh range
    print("KERNEL_OK")
</pallas_src>

<mosaic_0001>
module attributes {stable_mosaic.version = 11 : i64} {
  func.func @_encoder_kernel(%arg0: i32, %arg1: memref<8x256xf32, #tpu.memory_space<vmem>>, %arg2: memref<256x512xbf16, #tpu.memory_space<vmem>>, %arg3: memref<1x512xf32, #tpu.memory_space<vmem>>, %arg4: memref<8x512xf32, #tpu.memory_space<vmem>>, %arg5: memref<8x512xf32, #tpu.memory_space<vmem>>) attributes {dimension_semantics = [#tpu.dimension_semantics<arbitrary>], iteration_bounds = array<i64: 3>, scalar_prefetch = 0 : i64, scratch_operands = 1 : i64, tpu.core_type = #tpu.core_type<tc>, window_params = [{transform_indices = @transform_0, window_bounds = array<i64: 8, 256>}, {transform_indices = @transform_1, window_bounds = array<i64: 256, 512>}, {pipeline_mode = #tpu.pipeline_mode<synchronous>, transform_indices = @transform_2, window_bounds = array<i64: 1, 512>}, {pipeline_mode = #tpu.pipeline_mode<synchronous>, transform_indices = @transform_3, window_bounds = array<i64: 8, 512>}]} {
    %c0_i32 = arith.constant 0 : i32
    %0 = arith.cmpi eq, %arg0, %c0_i32 : i32
    %1 = arith.extui %0 : i1 to i32
    %c0_i32_0 = arith.constant 0 : i32
    %2 = arith.cmpi ne, %1, %c0_i32_0 : i32
    scf.if %2 {
      %cst_9 = arith.constant 0.000000e+00 : f32
      %13 = vector.broadcast %cst_9 : f32 to vector<8x512xf32>
      %c0_10 = arith.constant 0 : index
      %c0_11 = arith.constant 0 : index
      %14 = vector.load %arg5[%c0_10, %c0_11] : memref<8x512xf32, #tpu.memory_space<vmem>>, vector<8x512xf32>
      tpu.vector_store %arg5[%c0_10, %c0_11], %13 {strides = array<i32>} : memref<8x512xf32, #tpu.memory_space<vmem>>, vector<8x512xf32>,
    } else {
    }
    %c0 = arith.constant 0 : index
    %c0_1 = arith.constant 0 : index
    %3 = vector.load %arg5[%c0, %c0_1] : memref<8x512xf32, #tpu.memory_space<vmem>>, vector<8x512xf32>
    %c0_2 = arith.constant 0 : index
    %c0_3 = arith.constant 0 : index
    %4 = vector.load %arg1[%c0_2, %c0_3] : memref<8x256xf32, #tpu.memory_space<vmem>>, vector<8x256xf32>
    %5 = arith.truncf %4 : vector<8x256xf32> to vector<8x256xbf16>
    %c0_4 = arith.constant 0 : index
    %c0_5 = arith.constant 0 : index
    %6 = vector.load %arg2[%c0_4, %c0_5] : memref<256x512xbf16, #tpu.memory_space<vmem>>, vector<256x512xbf16>
    %cst = arith.constant dense<0.000000e+00> : vector<8x512xf32>
    %7 = tpu.matmul %5, %6, %cst {dimension_numbers = #tpu.dot_dimension_numbers<[1], [0], [0], [1], [0, 0, 1, 1], [], []>} : vector<8x256xbf16>, vector<256x512xbf16>, vector<8x512xf32> -> vector<8x512xf32>
    %8 = arith.addf %3, %7 : vector<8x512xf32>
    %c0_6 = arith.constant 0 : index
    %c0_7 = arith.constant 0 : index
    %9 = vector.load %arg5[%c0_6, %c0_7] : memref<8x512xf32, #tpu.memory_space<vmem>>, vector<8x512xf32>
    tpu.vector_store %arg5[%c0_6, %c0_7], %8 {strides = array<i32>} : memref<8x512xf32, #tpu.memory_space<vmem>>, vector<8x512xf32>,
    %c2_i32 = arith.constant 2 : i32
    %10 = arith.cmpi eq, %arg0, %c2_i32 : i32
    %11 = arith.extui %10 : i1 to i32
    %c0_i32_8 = arith.constant 0 : i32
    %12 = arith.cmpi ne, %11, %c0_i32_8 : i32
    scf.if %12 {
      %c0_9 = arith.constant 0 : index
      %c0_10 = arith.constant 0 : index
      %13 = vector.load %arg5[%c0_9, %c0_10] : memref<8x512xf32, #tpu.memory_space<vmem>>, vector<8x512xf32>
      %c0_11 = arith.constant 0 : index
      %c0_12 = arith.constant 0 : index
      %14 = vector.load %arg3[%c0_11, %c0_12] : memref<1x512xf32, #tpu.memory_space<vmem>>, vector<1x512xf32>
      %15 = vector.broadcast %14 : vector<1x512xf32> to vector<8x512xf32>
      %16 = arith.addf %13, %15 : vector<8x512xf32>
      %cst_13 = arith.constant 0.000000e+00 : f32
      %17 = vector.broadcast %cst_13 : f32 to vector<8x512xf32>
      %18 = arith.maximumf %16, %17 : vector<8x512xf32>
      %c0_14 = arith.constant 0 : index
      %c0_15 = arith.constant 0 : index
      %19 = vector.load %arg4[%c0_14, %c0_15] : memref<8x512xf32, #tpu.memory_space<vmem>>, vector<8x512xf32>
      tpu.vector_store %arg4[%c0_14, %c0_15], %18 {strides = array<i32>} : memref<8x512xf32, #tpu.memory_space<vmem>>, vector<8x512xf32>,
    } else {
    }
    return
  }
  func.func @transform_0(%arg0: i32) -> (i32, i32) {
    %c0_i32 = arith.constant 0 : i32
    %c0_i32_0 = arith.constant 0 : i32
    return %c0_i32, %arg0 : i32, i32
  }
  func.func @transform_1(%arg0: i32) -> (i32, i32) {
    %c0_i32 = arith.constant 0 : i32
    %c0_i32_0 = arith.constant 0 : i32
    return %arg0, %c0_i32 : i32, i32
  }
  func.func @transform_2(%arg0: i32) -> (i32, i32) {
    %c0_i32 = arith.constant 0 : i32
    %c0_i32_0 = arith.constant 0 : i32
    %c0_i32_1 = arith.constant 0 : i32
    return %c0_i32, %c0_i32_0 : i32, i32
  }
  func.func @transform_3(%arg0: i32) -> (i32, i32) {
    %c0_i32 = arith.constant 0 : i32
    %c0_i32_0 = arith.constant 0 : i32
    %c0_i32_1 = arith.constant 0 : i32
    return %c0_i32, %c0_i32_0 : i32, i32
  }
}

</mosaic_0001>

<bundles_post_ra>
// kernel: tpu_custom_call.1
= control target key start
LH: loop header
LB: loop body
LE: loop exit
PB: predicated region body
PF: predicated region fallthrough
CT: control target
= control target key end

     0   :  { %8 = vsyncpa [#allocation4], 0  ;;  %s1471_s0 = inlined_call_operand.hbm [shape: f32[8,768], index: 0, kind: input, shape index: {}]   ;;  %s1472_s1 = inlined_call_operand.hbm [shape: bf16[768,512], index: 1, kind: input, shape index: {}]   ;;  %s1473_s2 = inlined_call_operand.vmem [shape: f32[1,512], index: 2, kind: input, shape index: {}]   ;;  %s1474_s3 = inlined_call_operand.hbm [shape: f32[8,512], index: 3, kind: output, shape index: {}]  }
   0x1   :  { %10 = vsyncpa [#allocation4 + $0x1], 0 }
   0x2   :  { %11 = vsyncpa [#allocation7], 0 }
   0x3   :  { %13 = vsyncpa [#allocation7 + $0x1], 0 }
   0x4   :  { %14 = vsyncpa [#allocation5], 0  ;;  %s1222_s12 = smov 0   ;;  %s1224_s13 = smov 0  }
   0x5   :  { %s1226_s14 = smov 0   ;;  %s1228_s15 = smov 0  }
   0x6 LB: > { %s1241_s16 = sadd.s32 4294967295, %s1194_s15   ;;  %s1244_s17 = sadd.s32 1, %s1194_s15   ;;  %s1194_s15 = sphi %s1228_s15, %s1485_s15   ;;  %s1190_s14 = sphi %s1226_s14, %s1484_s14   ;;  %s1186_s13 = sphi %s1224_s13, %s1483_s13   ;;  %s1182_s12 = sphi %s1222_s12, %s1482_s12  }
   0x7   : > { %s24_s18 = ssub.s32 %s1194_s15, %s1244_s17  ;;  %s27_s19 = sadd.s32 1, %s1190_s14 }
   0x8   : > { %p25_p0 = scmp.eq.s32.totalorder %s24_s18, 0  ;;  %p34_p1 = scmp.ne.s32.totalorder %s1190_s14, %s1186_s13 }
   0x9   : > { %p35_p2 = scmp.eq.s32.totalorder %s1194_s15, 0  ;;  %p40_p3 = scmp.ne.s32.totalorder %s1186_s13, %s1182_s12 }
   0xa   : > { %s1254_s20 = scalar_select %p25_p0, %s1190_s14, %s27_s19  }
   0xb   : > { %p36_p4 = por %p35_p2, %p34_p1  ;;  %p41_p5 = scmp.eq.s32.totalorder %s1241_s16, 0 }
   0xc   : > { %p931_p6 = scmp.lt.s32.totalorder %s1194_s15, 3  ;;  %s1263_s22 = sand.u32 1, %s1190_s14  }
   0xd   : > { %p1258_p7 = por %p41_p5, %p40_p3  ;;  %s833_s23 = sshll.u32 %s1263_s22, 4 }
   0xe   : > { %s913_s24 = sshll.u32 %s1194_s15, 8  ;;  %s139_s28 = scalar_lea.vmem [#allocation3], %s833_s23 }
   0xf   : > { %s1476_s21 = scalar_select %p1258_p7, 1, 0 }
  0x10   : > { %s1270_s27 = scalar_lea.hbm %s1471_s0, %s913_s24  ;;  %s147_s29 = sshll.u32 %s139_s28, 4  ;;  %s1272_s29 = int_to_ptr.vmem [resolvable:$true] %s147_s29 }
  0x11   : > { %p1274_p8 = pnand %p931_p6, %p36_p4  ;;  %s136_s4 = scalar_lea.sflag [#allocation4], %s1263_s22 }
  0x12   : > { %s1066_s5 = scalar_lea.hbm %s1270_s27, 256  ;;  %s1071_s8 = scalar_lea.hbm %s1471_s0, 768 }
  0x13   : > { %p1067_p11 = scmp.ne.s32.totalorder %s1270_s27, %s1066_s5  ;;  %p1068_p12 = pneg %p1274_p8 }
  0x14   : > { %p1072_p1 = scmp.lt.u32.totalorder %s1270_s27, %s1471_s0  ;;  %p1073_p2 = scmp.lt.u32.totalorder %s1071_s8, %s1066_s5 }
  0x15   : > { %p1069_p13 = pnand %p1068_p12, %p1067_p11  ;;  %p1075_p4 = scmp.lt.u32.totalorder %s1066_s5, %s1270_s27 }
  0x16   : > { %p1074_p3 = por %p1073_p2, %p1072_p1 }
  0x17   : > { %p1070_p0 = pneg %p1069_p13 }
  0x18   : > { %p1076_p5 = por %p1075_p4, %p1074_p3 }
  0x1a   : > { %p1077_p6 = pnand %p1076_p5, %p1070_p0 }
  0x1c   : > { %1080 = shalt.err (!%p1077_p6)
}
  0x1d   : > { %s1081_s11 = scalar_lea.vmem %s1272_s29, 256  ;;  %s1196_s12 = smov [#allocation3]  }
  0x1e   : > { %p1082_p11 = scmp.ne.s32.totalorder %s1272_s29, %s1081_s11  ;;  %s1086_s18 = sshll.u32 %s1196_s12, 4  ;;  %s1087_s18 = int_to_ptr.vmem [resolvable:$false] %s1086_s18 }
  0x1f   : > { %s1088_s19 = scalar_lea.vmem %s1087_s18, 512  ;;  %p1089_p10 = scmp.lt.s32.totalorder %s1272_s29, %s1087_s18 }
  0x20   : > { %p1084_p13 = pnand %p1082_p11, %p1068_p12  ;;  %p1090_p1 = scmp.lt.s32.totalorder %s1088_s19, %s1081_s11 }
  0x22   : > { %p1085_p9 = pneg %p1084_p13  ;;  %p1091_p2 = por %p1090_p1, %p1089_p10 }
  0x24   : > { %p1092_p3 = pnand %p1091_p2, %p1085_p9 }
  0x26   : > { %1095 = shalt.err (!%p1092_p3)
}
  0x27   : > { %927 = dma.hbm_to_vmem [thread:$0]  (!%p1274_p8), %s1270_s27, 256, %s1272_s29, %s136_s4  }
  0x28   : > { %p1478_p0 = scmp.lt.s32.totalorder %s1194_s15, 4  ;;  %p1479_p4 = scmp.ge.s32.totalorder %s1194_s15, 1 }
  0x29   : > { %s836_s24 = sshll.u32 %s1263_s22, 9  ;;  %s915_s25 = sshll.u32 %s1194_s15, 13 }
  0x2a   : > { %p1310_p5 = pnand %p1479_p4, %p1478_p0  ;;  %s1319_s5 = scalar_lea.hbm %s1472_s1, %s915_s25 }
  0x2b   : > { %s158_s6 = scalar_lea.vmem [#allocation6], %s836_s24  ;;  %s155_s27 = scalar_lea.sflag [#allocation7], %s1263_s22 }
  0x2c   : > { %s166_s7 = sshll.u32 %s158_s6, 4  ;;  %s1096_s29 = scalar_lea.hbm %s1319_s5, 8192  ;;  %s1321_s7 = int_to_ptr.vmem [resolvable:$true] %s166_s7 }
  0x2d   : > { %p1097_p9 = scmp.ne.s32.totalorder %s1319_s5, %s1096_s29  ;;  %s1101_s8 = scalar_lea.hbm %s1472_s1, 24576 }
  0x2e   : > { %p1102_p11 = scmp.lt.u32.totalorder %s1319_s5, %s1472_s1  ;;  %p1103_p13 = scmp.lt.u32.totalorder %s1101_s8, %s1096_s29 }
  0x2f   : > { %p1099_p10 = pnand %p1097_p9, %p1068_p12  ;;  %p1105_p2 = scmp.lt.u32.totalorder %s1096_s29, %s1319_s5 }
  0x30   : > { %p1104_p1 = por %p1103_p13, %p1102_p11 }
  0x31   : > { %p1100_p6 = pneg %p1099_p10 }
  0x32   : > { %p1106_p3 = por %p1105_p2, %p1104_p1 }
  0x34   : > { %p1107_p0 = pnand %p1106_p3, %p1100_p6 }
  0x36   : > { %1110 = shalt.err (!%p1107_p0)
}
  0x37   : > { %s1111_s11 = scalar_lea.vmem %s1321_s7, 8192  ;;  %s1197_s12 = smov [#allocation6]  }
  0x38   : > { %p1112_p4 = scmp.ne.s32.totalorder %s1321_s7, %s1111_s11  ;;  %s1116_s18 = sshll.u32 %s1197_s12, 4  ;;  %s1117_s18 = int_to_ptr.vmem [resolvable:$false] %s1116_s18 }
  0x39   : > { %s1118_s19 = scalar_lea.vmem %s1117_s18, 16384  ;;  %p1119_p7 = scmp.lt.s32.totalorder %s1321_s7, %s1117_s18 }
  0x3a   : > { %p1114_p9 = pnand %p1112_p4, %p1068_p12  ;;  %p1120_p11 = scmp.lt.s32.totalorder %s1118_s19, %s1111_s11 }
  0x3c   : > { %p1115_p10 = pneg %p1114_p9  ;;  %p1121_p13 = por %p1120_p11, %p1119_p7 }
  0x3e   : > { %p1122_p1 = pnand %p1121_p13, %p1115_p10 }
  0x40   : > { %1125 = shalt.err (!%p1122_p1)
}
  0x41   : > { %s1198_s24 = smov 256   ;;  %s1199_s25 = smov 16  }
  0x42   : > { %930 = dma.hbm_to_vmem [thread:$0]  (!%p1274_p8), %s1319_s5, 8192, %s1321_s7, %s155_s27, %s1198_s24, %s1198_s24, %s1199_s25  }
  0x43   : > { %178 = sbr.rel (%p1310_p5) target bundleno = 405 (0x195), region = 32  ;;  %s180_s26 = sand.u32 (!%p1310_p5), 1, %s1186_s13  }
  0x44   : > { %s841_s28 = sshll.u32 (!%p1310_p5), %s180_s26, 4  ;;  %s181_s6 = scalar_lea.sflag (!%p1310_p5), [#allocation4], %s180_s26 }
  0x45   : > { %s1352_s29 = scalar_lea.vmem (!%p1310_p5), [#allocation3], %s841_s28  ;;  %p1481_p7 = scmp.ne.s32.totalorder (!%p1310_p5), %s1476_s21, 0 }
  0x4a   : > { %1169 = dma.done.wait (%p1481_p7), %s181_s6, 256  }
  0x4b   : > { %1171 = vsyncadd (%p1481_p7), %s181_s6, 4294967040  ;;  %s842_s15 = sshll.u32 %s180_s26, 9  ;;  %s190_s30 = scalar_lea.sflag [#allocation7], %s180_s26 }
  0x4c   : > { %s1358_s22 = scalar_lea.vmem [#allocation6], %s842_s15 }
  0x4d   : > { %1173 = dma.done.wait (%p1481_p7), %s190_s30, 8192  }
  0x4e   : > { %1175 = vsyncadd (%p1481_p7), %s190_s30, 4294959104  ;;  %p843_p8 = scmp.ne.s32.totalorder %s1241_s16, 0 }
  0x4f   : > { %v1200_v0 = vmov (!%p843_p8), 0.0  }
  0x50   : > { %221 = sbr.rel (%p843_p8) target bundleno = 87 (0x57), region = 44  ;;  %222 = vst [vmem:[#allocation2] sm:$0xff] (!%p843_p8), %v1200_v0  ;;  %223 = vst [vmem:[#allocation2 + $0x8] sm:$0xff] (!%p843_p8), %v1200_v0 }
  0x51   : > { %224 = vst [vmem:[#allocation2 + $0x10] sm:$0xff] (!%p843_p8), %v1200_v0  ;;  %225 = vst [vmem:[#allocation2 + $0x18] sm:$0xff] (!%p843_p8), %v1200_v0 }
  0x57 PF: > { %v970_v1 = vld [vmem:[%s1358_s22 + $0x4] ss:$16 sps:$4 sm:$0xff]   ;;  %v972_v2 = vld [vmem:[%s1358_s22 + $0xc] ss:$16 sps:$4 sm:$0xff]   ;;  %v974_v3 = vld [vmem:[%s1358_s22] ss:$16 sps:$4 sm:$0xff]  }
  0x58   : > { %618 = vmatprep.subr.bf16.mxu0 %v970_v1  ;;  %v975_v4 = vld [vmem:[%s1358_s22 + $0x8] ss:$16 sps:$4 sm:$0xff]   ;;  %659 = vmatprep.subr.bf16.mxu1 %v972_v2  ;;  %v976_v5 = vld [vmem:[%s1358_s22 + $0x24] ss:$16 sps:$4 sm:$0xff]   ;;  %v978_v6 = vld [vmem:[%s1358_s22 + $0x2c] ss:$16 sps:$4 sm:$0xff]  }
  0x59   : > { %619 = vmatpush1.bf16.msra.mxu0 %v974_v3  ;;  %660 = vmatpush1.bf16.msra.mxu1 %v975_v4  ;;  %v980_v7 = vld [vmem:[%s1358_s22 + $0x20] ss:$16 sps:$4 sm:$0xff]   ;;  %v981_v8 = vld [vmem:[%s1358_s22 + $0x28] ss:$16 sps:$4 sm:$0xff]   ;;  %v982_v9 = vld [vmem:[%s1358_s22 + $0x44] ss:$16 sps:$4 sm:$0xff]  }
  0x5a   : > { %620 = vmatprep.subr.bf16.mxu0 %v976_v5  ;;  %661 = vmatprep.subr.bf16.mxu1 %v978_v6  ;;  %v984_v10 = vld [vmem:[%s1358_s22 + $0x4c] ss:$16 sps:$4 sm:$0xff]   ;;  %v986_v11 = vld [vmem:[%s1358_s22 + $0x40] ss:$16 sps:$4 sm:$0xff]   ;;  %v987_v12 = vld [vmem:[%s1358_s22 + $0x48] ss:$16 sps:$4 sm:$0xff]  }
  0x5b   : > { %v988_v13 = vld [vmem:[%s1358_s22 + $0x64] ss:$16 sps:$4 sm:$0xff]   ;;  %v990_v14 = vld [vmem:[%s1358_s22 + $0x6c] ss:$16 sps:$4 sm:$0xff]   ;;  %v992_v15 = vld [vmem:[%s1358_s22 + $0x60] ss:$16 sps:$4 sm:$0xff]  }
  0x5c   : > { %v993_v16 = vld [vmem:[%s1358_s22 + $0x68] ss:$16 sps:$4 sm:$0xff]   ;;  %v994_v17 = vld [vmem:[%s1358_s22 + $0x84] ss:$16 sps:$4 sm:$0xff]   ;;  %v996_v18 = vld [vmem:[%s1358_s22 + $0x8c] ss:$16 sps:$4 sm:$0xff]  }
  0x5d   : > { %621 = vmatpush1.bf16.msra.mxu0 %v980_v7  ;;  %662 = vmatpush1.bf16.msra.mxu1 %v981_v8  ;;  %v998_v19 = vld [vmem:[%s1358_s22 + $0x80] ss:$16 sps:$4 sm:$0xff]   ;;  %v999_v20 = vld [vmem:[%s1358_s22 + $0x88] ss:$16 sps:$4 sm:$0xff]   ;;  %v1000_v21 = vld [vmem:[%s1358_s22 + $0xa4] ss:$16 sps:$4 sm:$0xff]  }
  0x5e   : > { %622 = vmatprep.subr.bf16.mxu0 %v982_v9  ;;  %663 = vmatprep.subr.bf16.mxu1 %v984_v10  ;;  %v1002_v22 = vld [vmem:[%s1358_s22 + $0xac] ss:$16 sps:$4 sm:$0xff]   ;;  %v1004_v23 = vld [vmem:[%s1358_s22 + $0xa0] ss:$16 sps:$4 sm:$0xff]   ;;  %v1005_v24 = vld [vmem:[%s1358_s22 + $0xa8] ss:$16 sps:$4 sm:$0xff]  }
  0x5f   : > { %v1006_v25 = vld [vmem:[%s1358_s22 + $0xc4] ss:$16 sps:$4 sm:$0xff]   ;;  %v1008_v26 = vld [vmem:[%s1358_s22 + $0xcc] ss:$16 sps:$4 sm:$0xff]   ;;  %v1010_v27 = vld [vmem:[%s1358_s22 + $0xc0] ss:$16 sps:$4 sm:$0xff]  }
  0x60   : > { %v1011_v28 = vld [vmem:[%s1358_s22 + $0xc8] ss:$16 sps:$4 sm:$0xff]   ;;  %v1012_v29 = vld [vmem:[%s1358_s22 + $0xe4] ss:$16 sps:$4 sm:$0xff]   ;;  %v1014_v30 = vld [vmem:[%s1358_s22 + $0xec] ss:$16 sps:$4 sm:$0xff]  }
  0x61   : > { %623 = vmatpush1.bf16.msra.mxu0 %v986_v11  ;;  %664 = vmatpush1.bf16.msra.mxu1 %v987_v12  ;;  %v1016_v31 = vld [vmem:[%s1358_s22 + $0xe0] ss:$16 sps:$4 sm:$0xff]   ;;  %v1017_v32 = vld [vmem:[%s1358_s22 + $0xe8] ss:$16 sps:$4 sm:$0xff]   ;;  %v1018_v33 = vld [vmem:[%s1358_s22 + $0x104] ss:$16 sps:$4 sm:$0xff]  }
  0x62   : > { %624 = vmatprep.subr.bf16.mxu0 %v988_v13  ;;  %665 = vmatprep.subr.bf16.mxu1 %v990_v14  ;;  %v1020_v34 = vld [vmem:[%s1358_s22 + $0x10c] ss:$16 sps:$4 sm:$0xff]   ;;  %v1022_v35 = vld [vmem:[%s1358_s22 + $0x100] ss:$16 sps:$4 sm:$0xff]   ;;  %v1023_v36 = vld [vmem:[%s1358_s22 + $0x108] ss:$16 sps:$4 sm:$0xff]  }
  0x63   : > { %v1024_v37 = vld [vmem:[%s1358_s22 + $0x124] ss:$16 sps:$4 sm:$0xff]   ;;  %v1026_v38 = vld [vmem:[%s1358_s22 + $0x12c] ss:$16 sps:$4 sm:$0xff]   ;;  %v1028_v39 = vld [vmem:[%s1358_s22 + $0x120] ss:$16 sps:$4 sm:$0xff]  }
  0x64   : > { %v1029_v40 = vld [vmem:[%s1358_s22 + $0x128] ss:$16 sps:$4 sm:$0xff]   ;;  %v1030_v41 = vld [vmem:[%s1358_s22 + $0x144] ss:$16 sps:$4 sm:$0xff]   ;;  %v1032_v42 = vld [vmem:[%s1358_s22 + $0x14c] ss:$16 sps:$4 sm:$0xff]  }
  0x65   : > { %625 = vmatpush1.bf16.msra.mxu0 %v992_v15  ;;  %666 = vmatpush1.bf16.msra.mxu1 %v993_v16  ;;  %v1034_v43 = vld [vmem:[%s1358_s22 + $0x140] ss:$16 sps:$4 sm:$0xff]   ;;  %v1035_v44 = vld [vmem:[%s1358_s22 + $0x148] ss:$16 sps:$4 sm:$0xff]   ;;  %v1036_v45 = vld [vmem:[%s1358_s22 + $0x164] ss:$16 sps:$4 sm:$0xff]  }
  0x66   : > { %626 = vmatprep.subr.bf16.mxu0 %v994_v17  ;;  %667 = vmatprep.subr.bf16.mxu1 %v996_v18  ;;  %v1038_v46 = vld [vmem:[%s1358_s22 + $0x16c] ss:$16 sps:$4 sm:$0xff]   ;;  %v1040_v49 = vld [vmem:[%s1358_s22 + $0x160] ss:$16 sps:$4 sm:$0xff]   ;;  %v1041_v50 = vld [vmem:[%s1358_s22 + $0x168] ss:$16 sps:$4 sm:$0xff]  }
  0x67   : > { %v231_v47 = vld [vmem:[%s1352_s29 + $0x8] sm:$0xff]  ;;  %v1042_v51 = vld [vmem:[%s1358_s22 + $0x184] ss:$16 sps:$4 sm:$0xff]   ;;  %v1046_v53 = vld [vmem:[%s1358_s22 + $0x180] ss:$16 sps:$4 sm:$0xff]   ;;  %p908_p12 = scmp.ne.s32.totalorder %s1241_s16, 2 }
  0x68   : > { %v233_v48 = vpack.c.bf16 %v231_v47, %v231_v47  ;;  %v1044_v52 = vld [vmem:[%s1358_s22 + $0x18c] ss:$16 sps:$4 sm:$0xff]   ;;  %v1047_v54 = vld [vmem:[%s1358_s22 + $0x188] ss:$16 sps:$4 sm:$0xff]   ;;  %v1048_v55 = vld [vmem:[%s1358_s22 + $0x1a4] ss:$16 sps:$4 sm:$0xff]  }
  0x69   : > { %627 = vmatpush1.bf16.msra.mxu0 %v998_v19  ;;  %668 = vmatpush1.bf16.msra.mxu1 %v999_v20  ;;  %v1050_v56 = vld [vmem:[%s1358_s22 + $0x1ac] ss:$16 sps:$4 sm:$0xff]   ;;  %v1052_v57 = vld [vmem:[%s1358_s22 + $0x1a0] ss:$16 sps:$4 sm:$0xff]   ;;  %v1053_v58 = vld [vmem:[%s1358_s22 + $0x1a8] ss:$16 sps:$4 sm:$0xff]  }
  0x6a   : > { %628 = vmatprep.subr.bf16.mxu0 %v1000_v21  ;;  %669 = vmatprep.subr.bf16.mxu1 %v1002_v22  ;;  %v1054_v59 = vld [vmem:[%s1358_s22 + $0x1c4] ss:$16 sps:$4 sm:$0xff]   ;;  %v1056_v60 = vld [vmem:[%s1358_s22 + $0x1cc] ss:$16 sps:$4 sm:$0xff]   ;;  %v1058_v61 = vld [vmem:[%s1358_s22 + $0x1c0] ss:$16 sps:$4 sm:$0xff]   ;;  %v718_v21 = vlaneseq (!%p908_p12) }
  0x6b   : > { %650 = vmatprep.mubr.bf16.mxu0 %v233_v48  ;;  %691 = vmatprep.mubr.bf16.mxu1 %v233_v48  ;;  %v1059_v62 = vld [vmem:[%s1358_s22 + $0x1c8] ss:$16 sps:$4 sm:$0xff]   ;;  %v1060_v63 = vld [vmem:[%s1358_s22 + $0x1e4] ss:$16 sps:$4 sm:$0xff]   ;;  %v1062_v0 = vld [vmem:[%s1358_s22 + $0x1ec] ss:$16 sps:$4 sm:$0xff]  }
  0x6c   : > { %v1064_v1 = vld [vmem:[%s1358_s22 + $0x1e0] ss:$16 sps:$4 sm:$0xff]   ;;  %v1065_v2 = vld [vmem:[%s1358_s22 + $0x1e8] ss:$16 sps:$4 sm:$0xff]   ;;  %v719_v22 = vshrl.u32 (!%p908_p12), %v718_v21, 7 }
  0x6d   : > { %629 = vmatpush1.bf16.msra.mxu0 %v1004_v23  ;;  %670 = vmatpush1.bf16.msra.mxu1 %v1005_v24  ;;  %v230_v3 = vld [vmem:[%s1352_s29] sm:$0xff]  ;;  %v227_v7 = vld [vmem:[#allocation2 + $0x8] sm:$0xff]  ;;  %v229_v8 = vld [vmem:[#allocation2 + $0x18] sm:$0xff] }
  0x6e   : > { %630 = vmatprep.subr.bf16.mxu0 %v1006_v25  ;;  %671 = vmatprep.subr.bf16.mxu1 %v1008_v26  ;;  %v232_v4 = vpack.c.bf16 %v230_v3, %v230_v3  ;;  %v226_v5 = vld [vmem:[#allocation2] sm:$0xff]  ;;  %v228_v6 = vld [vmem:[#allocation2 + $0x10] sm:$0xff]  ;;  %v720_v25 = vsub.s32 (!%p908_p12), 0, %v719_v22  ;;  %v724_v26 = vsub.s32 (!%p908_p12), 1, %v719_v22 }
  0x6f   : > { %v716_v23 = vld [vmem:[%s1473_s2] sm:$0xf] (!%p908_p12) }
  0x71   : > { %631 = vmatpush1.bf16.msra.mxu0 %v1010_v27  ;;  %672 = vmatpush1.bf16.msra.mxu1 %v1011_v28  ;;  %v728_v27 = vsub.s32 (!%p908_p12), 2, %v719_v22  ;;  %v732_v28 = vsub.s32 (!%p908_p12), 3, %v719_v22 }
  0x72   : > { %632 = vmatprep.subr.bf16.mxu0 %v1012_v29  ;;  %673 = vmatprep.subr.bf16.mxu1 %v1014_v30 }
  0x75   : > { %633 = vmatpush1.bf16.msra.mxu0 %v1016_v31  ;;  %674 = vmatpush1.bf16.msra.mxu1 %v1017_v32  ;;  %v721_v32 = vrot.slane (!%p908_p12), %v716_v23, %v720_v25 }
  0x76   : > { %634 = vmatprep.subr.bf16.mxu0 %v1018_v33  ;;  %675 = vmatprep.subr.bf16.mxu1 %v1020_v34  ;;  %v725_v33 = vrot.slane (!%p908_p12), %v716_v23, %v724_v26  ;;  %v729_v34 = vrot.slane (!%p908_p12), %v716_v23, %v728_v27 }
  0x79   : > { %635 = vmatpush1.bf16.msra.mxu0 %v1022_v35  ;;  %676 = vmatpush1.bf16.msra.mxu1 %v1023_v36  ;;  %v733_v35 = vrot.slane (!%p908_p12), %v716_v23, %v732_v28 }
  0x7a   : > { %636 = vmatprep.subr.bf16.mxu0 %v1024_v37  ;;  %677 = vmatprep.subr.bf16.mxu1 %v1026_v38 }
  0x7d   : > { %637 = vmatpush1.bf16.msra.mxu0 %v1028_v39  ;;  %678 = vmatpush1.bf16.msra.mxu1 %v1029_v40 }
  0x7e   : > { %638 = vmatprep.subr.bf16.mxu0 %v1030_v41  ;;  %679 = vmatprep.subr.bf16.mxu1 %v1032_v42 }
  0x81   : > { %639 = vmatpush1.bf16.msra.mxu0 %v1034_v43  ;;  %680 = vmatpush1.bf16.msra.mxu1 %v1035_v44 }
  0x82   : > { %640 = vmatprep.subr.bf16.mxu0 %v1036_v45  ;;  %681 = vmatprep.subr.bf16.mxu1 %v1038_v46 }
  0x85   : > { %641 = vmatpush1.bf16.msra.mxu0 %v1040_v49  ;;  %682 = vmatpush1.bf16.msra.mxu1 %v1041_v50 }
  0x86   : > { %642 = vmatprep.subr.bf16.mxu0 %v1042_v51  ;;  %683 = vmatprep.subr.bf16.mxu1 %v1044_v52 }
  0x89   : > { %643 = vmatpush1.bf16.msra.mxu0 %v1046_v53  ;;  %684 = vmatpush1.bf16.msra.mxu1 %v1047_v54 }
  0x8a   : > { %644 = vmatprep.subr.bf16.mxu0 %v1048_v55  ;;  %685 = vmatprep.subr.bf16.mxu1 %v1050_v56 }
  0x8d   : > { %645 = vmatpush1.bf16.msra.mxu0 %v1052_v57  ;;  %686 = vmatpush1.bf16.msra.mxu1 %v1053_v58 }
  0x8e   : > { %646 = vmatprep.subr.bf16.mxu0 %v1054_v59  ;;  %687 = vmatprep.subr.bf16.mxu1 %v1056_v60 }
  0x91   : > { %647 = vmatpush1.bf16.msra.mxu0 %v1058_v61  ;;  %688 = vmatpush1.bf16.msra.mxu1 %v1059_v62 }
  0x92   : > { %648 = vmatprep.subr.bf16.mxu0 %v1060_v63  ;;  %689 = vmatprep.subr.bf16.mxu1 %v1062_v0 }
  0x95   : > { %649 = vmatpush1.bf16.msra.mxu0 %v1064_v1  ;;  %690 = vmatpush1.bf16.msra.mxu1 %v1065_v2 }
  0x98   : > { %651 = vmatmul.mubr.bf16.vlgmr.msra.gmra.mrb[0].mxu0 %v232_v4  ;;  %692 = vmatmul.mubr.bf16.vlgmr.msra.gmra.mrb[0].mxu1 %v232_v4 }
 0x169   : > { %711 = sbr.rel (%p908_p12) target bundleno = 380 (0x17c), region = 48 }
 0x16b   : > { %v652_v9 = vpop.f32.mrb[0].mxu0  ;;  %v693_v10 = vpop.f32.mrb[0].mxu1 }
 0x16c   : > { %v700_v11 = vadd.f32 %v652_v9, %v226_v5  ;;  %v702_v12 = vadd.f32 %v693_v10, %v228_v6  ;;  %v654_v13 = vpop.f32.mrb[1].mxu0  ;;  %v695_v14 = vpop.f32.mrb[1].mxu1 }
 0x16d   : > { %v701_v15 = vadd.f32 %v654_v13, %v227_v7  ;;  %v703_v16 = vadd.f32 %v695_v14, %v229_v8  ;;  %v656_v17 = vpop.f32.mrb[2].mxu0  ;;  %v697_v18 = vpop.f32.mrb[2].mxu1 }
 0x16e   : > { %704 = vst [vmem:[#allocation2] sm:$0xff] %v700_v11  ;;  %706 = vst [vmem:[#allocation2 + $0x10] sm:$0xff] %v702_v12  ;;  %v657_v19 = vpop.f32.mrb[3].mxu0  ;;  %v698_v20 = vpop.f32.mrb[3].mxu1 }
 0x16f   : > { %705 = vst [vmem:[#allocation2 + $0x8] sm:$0xff] %v701_v15  ;;  %707 = vst [vmem:[#allocation2 + $0x18] sm:$0xff] %v703_v16 }
 0x175   : > { %v712_v24 = vld [vmem:[#allocation2] sm:$0xff]  ;;  %v714_v30 = vld [vmem:[#allocation2 + $0x10] sm:$0xff] }
 0x176   : > { %v713_v29 = vld [vmem:[#allocation2 + $0x8] sm:$0xff]  ;;  %v715_v31 = vld [vmem:[#allocation2 + $0x18] sm:$0xff]  ;;  %v738_v36 = vadd.f32 %v721_v32, %v712_v24  ;;  %v740_v38 = vadd.f32 %v729_v34, %v714_v30 }
 0x177   : > { %v739_v37 = vadd.f32 %v725_v33, %v713_v29  ;;  %v741_v39 = vadd.f32 %v733_v35, %v715_v31 }
 0x178   : > { %v742_v40 = vmax.f32 %v738_v36, 0.0  ;;  %v744_v42 = vmax.f32 %v740_v38, 0.0 }
 0x179   : > { %v743_v41 = vmax.f32 %v739_v37, 0.0  ;;  %v745_v43 = vmax.f32 %v741_v39, 0.0 }
 0x17a   : > { %746 = vst [vmem:[#allocation8] sm:$0xff] %v742_v40  ;;  %748 = vst [vmem:[#allocation8 + $0x10] sm:$0xff] %v744_v42 }
 0x17b   : > { %747 = vst [vmem:[#allocation8 + $0x8] sm:$0xff] %v743_v41  ;;  %749 = vst [vmem:[#allocation8 + $0x18] sm:$0xff] %v745_v43 }
 0x17c PF: > { %p932_p5 = scmp.eq.s32.totalorder %s1241_s16, 2  ;;  %s1201_s5 = smov [#allocation8]  }
 0x17d   : > { %s757_s7 = sshll.u32 %s1201_s5, 4  ;;  %s758_s7 = int_to_ptr.vmem [resolvable:$true] %s757_s7 }
 0x17e   : > { %s1126_s27 = scalar_lea.vmem %s758_s7, 512  ;;  %p1133_p0 = scmp.lt.s32.totalorder %s758_s7, %s758_s7 }
 0x17f   : > { %p1127_p6 = scmp.ne.s32.totalorder %s758_s7, %s1126_s27  ;;  %p1134_p4 = scmp.lt.s32.totalorder %s1126_s27, %s1126_s27 }
 0x181   : > { %p1128_p2 = pnand %p1127_p6, %p932_p5  ;;  %p1135_p9 = por %p1134_p4, %p1133_p0 }
 0x183   : > { %p1129_p3 = pneg %p1128_p2 }
 0x185   : > { %p1136_p10 = pnand %p1135_p9, %p1129_p3 }
 0x187   : > { %1139 = shalt.err (!%p1136_p10)
}
 0x188   : > { %s1140_s9 = scalar_lea.hbm %s1474_s3, 512 }
 0x189   : > { %p1141_p11 = scmp.ne.s32.totalorder %s1474_s3, %s1140_s9  ;;  %p1146_p7 = scmp.lt.u32.totalorder %s1140_s9, %s1474_s3 }
 0x18b   : > { %p1142_p13 = pnand %p1141_p11, %p932_p5 }
 0x18d   : > { %p1143_p1 = pneg %p1142_p13 }
 0x18f   : > { %p1148_p8 = pnand %p1146_p7, %p1143_p1 }
 0x191   : > { %1151 = shalt.err (!%p1148_p8)
}
 0x192   : > { %921 = dma.vmem_to_hbm [thread:$0]  (%p932_p5), %s758_s7, 512, %s1474_s3, [#allocation5]  }
 0x193   : > { %1177 = dma.done.wait (%p932_p5), [#allocation5], 512  }
 0x194   : > { %1179 = vsyncadd (%p932_p5), [#allocation5], 4294966784 }
 0x195 PF: > { %p17_p12 = scmp.ge.s32.totalorder %s1244_s17, 5   ;;  %s1482_s12 = smov %s1186_s13 }
 0x196   : > { %s1483_s13 = smov %s1190_s14  ;;  %s1484_s14 = smov %s1254_s20 }
 0x197   : > { %s1485_s15 = smov %s1244_s17  ;;  %19 = sbr.rel (!%p17_p12) target bundleno = 6 (0x6), region = 90 }
 0x19e   :  { %770 = vsyncpa [#allocation4], 1 }
 0x19f   :  { %772 = vsyncpa [#allocation4 + $0x1], 1 }
 0x1a0   :  { %773 = vsyncpa [#allocation7], 1 }
 0x1a1   :  { %775 = vsyncpa [#allocation7 + $0x1], 1 }
 0x1a2   :  { %776 = vsyncpa [#allocation5], 1 }
 0x1a3   :  { %778 = vsyncpa [#allocation5 + $0x1], 1 }

</bundles_post_ra>
